<compile_context>
chip_gen: v5e
topology: v5e:2x2
jax: 0.10.0
libtpu: 0.0.40
codegen_flags: <defaults>
</compile_context>

<pallas_src>
import functools

import jax
import jax.numpy as jnp
from jax.experimental import pallas as pl
from jax.experimental.pallas import tpu as pltpu

_LANE = 128
_SUBLANE = 8


def _round_up(x, m):
    return ((x + m - 1) // m) * m


def _mlp_kernel(d_ref, w1t_ref, b1_ref, w2t_ref, b2_ref, o_ref):
    # fc_1: (tb, C) @ (C, Hp) -> f32 accumulator; bias add + LeakyReLU in f32.
    h = jnp.dot(d_ref[...], w1t_ref[...], preferred_element_type=jnp.float32)
    h = h + b1_ref[...]
    h = jnp.maximum(h, 0.1 * h)                       # LeakyReLU(0.1): mul+max
    # fc_2: (tb, Hp) @ (Hp, E) -> f32; bias add in f32; narrow (E-lane) store.
    out = jnp.dot(h.astype(w2t_ref.dtype), w2t_ref[...],
                  preferred_element_type=jnp.float32)
    o_ref[...] = (out + b2_ref[...]).astype(o_ref.dtype)


def prepare_params(w1, b1, w2, b2, compute_dtype=jnp.float32):
    """One-time parameter prep (call at init, NOT per forward).

    w1: (H, C), b1: (H,), w2: (E, H), b2: (E,).
    Returns kwargs for shortest_path_net_forward:
      w1t: (C, Hp), b1: (1, Hp), w2t: (Hp, E), b2: (1, E),
    where Hp = round_up(H, 128). Padded hidden units are exactly zero (zero
    pre-activation -> zero through LeakyReLU -> zero contribution in fc_2),
    so the math is unchanged. E is intentionally NOT padded: the kernel
    writes only the E useful output lanes.
    """
    H, C = w1.shape
    E, H2 = w2.shape
    assert H2 == H
    Hp = _round_up(H, _LANE)

    w1t = jnp.zeros((C, Hp), compute_dtype).at[:, :H].set(
        w1.T.astype(compute_dtype))
    b1r = jnp.zeros((1, Hp), jnp.float32).at[:, :H].set(
        b1.astype(jnp.float32)[None, :])
    w2t = jnp.zeros((Hp, E), compute_dtype).at[:H, :].set(
        w2.T.astype(compute_dtype))
    b2r = b2.astype(jnp.float32).reshape(1, E)
    return dict(w1t=w1t, b1=b1r, w2t=w2t, b2=b2r)


@functools.partial(jax.jit, static_argnames=("block_b", "out_dtype"))
def shortest_path_net_forward(d, w1t, b1, w2t, b2, *, block_b=4096,
                              out_dtype=None):
    """d: (B, C) context; params from prepare_params(). Returns (B, E)."""
    B, C = d.shape
    Hp = w1t.shape[1]
    E = w2t.shape[1]
    if out_dtype is None:
        out_dtype = d.dtype

    # One cast in the wrapper (no-op for f32 / when d is already bf16).
    compute_dtype = w1t.dtype
    if d.dtype != compute_dtype:
        d = d.astype(compute_dtype)

    # Batch tile: big enough to amortize the ~0.35us/step overhead, sublane
    # aligned, and (when possible) small enough that the grid has >= 2 steps
    # so v7x's two TensorCores both get work and writeback overlaps compute.
    if B <= block_b:
        tb = max(_SUBLANE, _round_up(pl.cdiv(B, 2), _SUBLANE))
        if tb >= B:
            tb = B          # tiny batch: single full block (== array dims)
    else:
        tb = block_b
    nb = pl.cdiv(B, tb)      # partial last block: OOB rows dropped on write

    in_isz = jnp.dtype(compute_dtype).itemsize
    out_isz = jnp.dtype(out_dtype).itemsize
    flops = 2 * B * (C * Hp + Hp * E)
    bytes_accessed = (B * C * in_isz + (C * Hp + Hp * E) * in_isz
                      + 4 * (Hp + E) + B * E * out_isz)

    out = pl.pallas_call(
        _mlp_kernel,
        out_shape=jax.ShapeDtypeStruct((B, E), out_dtype),
        grid_spec=pltpu.PrefetchScalarGridSpec(
            num_scalar_prefetch=0,
            grid=(nb,),
            in_specs=[
                pl.BlockSpec((tb, C), lambda i: (i, 0)),    # activations: tiled
                pl.BlockSpec((C, Hp), lambda i: (0, 0)),    # weights: resident
                pl.BlockSpec((1, Hp), lambda i: (0, 0)),
                pl.BlockSpec((Hp, E), lambda i: (0, 0)),
                pl.BlockSpec((1, E), lambda i: (0, 0)),
            ],
            out_specs=pl.BlockSpec((tb, E), lambda i: (i, 0)),
        ),
        compiler_params=pltpu.CompilerParams(
            dimension_semantics=("parallel",),              # v7x: 2 TCs split batch
            vmem_limit_bytes=32 * 1024 * 1024),             # headroom on v5e default
        cost_estimate=pl.CostEstimate(
            flops=flops, transcendentals=0, bytes_accessed=bytes_accessed),
    )(d, w1t, b1, w2t, b2)
    return out


def _init_linear(key, out_features, in_features):
    # Deterministic init mimicking PyTorch nn.Linear: U(-1/sqrt(fan_in), +1/sqrt(fan_in)).
    kw, kb = jax.random.split(key)
    bound = 1.0 / jnp.sqrt(jnp.float32(in_features))
    w = jax.random.uniform(kw, (out_features, in_features), jnp.float32, -bound, bound)
    b = jax.random.uniform(kb, (out_features,), jnp.float32, -bound, bound)
    return w, b


if __name__ == "__main__":
    # Module hyper-parameters (synthetic, small):
    grid_size = 4
    num_vertices = grid_size * grid_size                      # A.shape[0] = 16
    num_edges = 2 * grid_size * (grid_size - 1)               # A.shape[1] = 24 (grid graph)
    context_size = 8
    hidden_dim = 10 * context_size                            # 80
    batch = 2

    key = jax.random.PRNGKey(0)
    k_d, k_fc1, k_fc2 = jax.random.split(key, 3)

    d = jax.random.normal(k_d, (batch, context_size), jnp.float32)
    w1, b1 = _init_linear(k_fc1, hidden_dim, context_size)    # fc_1: C -> H
    w2, b2 = _init_linear(k_fc2, num_edges, hidden_dim)       # fc_2: H -> E

    # One-time parameter prep (transpose / pad / cast hoisted out of forward).
    # For production on v5e/v6e/v7x, pass compute_dtype=jnp.bfloat16 here and
    # out_dtype=jnp.bfloat16 below (demo keeps f32 for tight tolerances).
    params = prepare_params(w1, b1, w2, b2, compute_dtype=jnp.float32)

    out = shortest_path_net_forward(d, **params)
    out = jax.block_until_ready(out)

    # Pure-JAX reference check of the same math.
    h_ref = d @ w1.T + b1
    h_ref = jnp.where(h_ref > 0, h_ref, 0.1 * h_ref)
    ref = h_ref @ w2.T + b2
    assert out.shape == (batch, num_edges)
    assert jnp.allclose(out, ref, atol=1e-5, rtol=1e-5)

    # TODO(synk): shortest_path_solver is not used in forward() and is not implemented.
    print("KERNEL_OK")
</pallas_src>

<mosaic_0001>
module attributes {stable_mosaic.version = 11 : i64} {
  func.func @_mlp_kernel(%arg0: i32, %arg1: memref<2x8xf32, #tpu.memory_space<vmem>>, %arg2: memref<8x128xf32, #tpu.memory_space<vmem>>, %arg3: memref<1x128xf32, #tpu.memory_space<vmem>>, %arg4: memref<128x24xf32, #tpu.memory_space<vmem>>, %arg5: memref<1x24xf32, #tpu.memory_space<vmem>>, %arg6: memref<2x24xf32, #tpu.memory_space<vmem>>) attributes {dimension_semantics = [#tpu.dimension_semantics<parallel>], iteration_bounds = array<i64: 1>, scalar_prefetch = 0 : i64, scratch_operands = 0 : i64, tpu.core_type = #tpu.core_type<tc>, window_params = [{transform_indices = @transform_0, window_bounds = array<i64: 2, 8>}, {pipeline_mode = #tpu.pipeline_mode<synchronous>, transform_indices = @transform_1, window_bounds = array<i64: 8, 128>}, {pipeline_mode = #tpu.pipeline_mode<synchronous>, transform_indices = @transform_2, window_bounds = array<i64: 1, 128>}, {pipeline_mode = #tpu.pipeline_mode<synchronous>, transform_indices = @transform_3, window_bounds = array<i64: 128, 24>}, {pipeline_mode = #tpu.pipeline_mode<synchronous>, transform_indices = @transform_4, window_bounds = array<i64: 1, 24>}, {transform_indices = @transform_5, window_bounds = array<i64: 2, 24>}]} {
    %c0 = arith.constant 0 : index
    %c0_0 = arith.constant 0 : index
    %0 = vector.load %arg1[%c0, %c0_0] : memref<2x8xf32, #tpu.memory_space<vmem>>, vector<2x8xf32>
    %c0_1 = arith.constant 0 : index
    %c0_2 = arith.constant 0 : index
    %1 = vector.load %arg2[%c0_1, %c0_2] : memref<8x128xf32, #tpu.memory_space<vmem>>, vector<8x128xf32>
    %cst = arith.constant dense<0.000000e+00> : vector<2x128xf32>
    %2 = tpu.matmul %0, %1, %cst {dimension_numbers = #tpu.dot_dimension_numbers<[1], [0], [0], [1], [0, 0, 1, 1], [], []>} : vector<2x8xf32>, vector<8x128xf32>, vector<2x128xf32> -> vector<2x128xf32>
    %c0_3 = arith.constant 0 : index
    %c0_4 = arith.constant 0 : index
    %3 = vector.load %arg3[%c0_3, %c0_4] : memref<1x128xf32, #tpu.memory_space<vmem>>, vector<1x128xf32>
    %4 = vector.broadcast %3 : vector<1x128xf32> to vector<2x128xf32>
    %5 = arith.addf %2, %4 : vector<2x128xf32>
    %cst_5 = arith.constant 1.000000e-01 : f32
    %6 = vector.broadcast %cst_5 : f32 to vector<2x128xf32>
    %7 = arith.mulf %6, %5 : vector<2x128xf32>
    %8 = arith.maximumf %5, %7 : vector<2x128xf32>
    %c0_6 = arith.constant 0 : index
    %c0_7 = arith.constant 0 : index
    %9 = vector.load %arg4[%c0_6, %c0_7] : memref<128x24xf32, #tpu.memory_space<vmem>>, vector<128x24xf32>
    %cst_8 = arith.constant dense<0.000000e+00> : vector<2x24xf32>
    %10 = tpu.matmul %8, %9, %cst_8 {dimension_numbers = #tpu.dot_dimension_numbers<[1], [0], [0], [1], [0, 0, 1, 1], [], []>} : vector<2x128xf32>, vector<128x24xf32>, vector<2x24xf32> -> vector<2x24xf32>
    %c0_9 = arith.constant 0 : index
    %c0_10 = arith.constant 0 : index
    %11 = vector.load %arg5[%c0_9, %c0_10] : memref<1x24xf32, #tpu.memory_space<vmem>>, vector<1x24xf32>
    %12 = vector.broadcast %11 : vector<1x24xf32> to vector<2x24xf32>
    %13 = arith.addf %10, %12 : vector<2x24xf32>
    %c0_11 = arith.constant 0 : index
    %c0_12 = arith.constant 0 : index
    %14 = vector.load %arg6[%c0_11, %c0_12] : memref<2x24xf32, #tpu.memory_space<vmem>>, vector<2x24xf32>
    tpu.vector_store %arg6[%c0_11, %c0_12], %13 {strides = array<i32>} : memref<2x24xf32, #tpu.memory_space<vmem>>, vector<2x24xf32>,
    return
  }
  func.func @transform_0(%arg0: i32) -> (i32, i32) {
    %c0_i32 = arith.constant 0 : i32
    %c0_i32_0 = arith.constant 0 : i32
    return %arg0, %c0_i32 : i32, i32
  }
  func.func @transform_1(%arg0: i32) -> (i32, i32) {
    %c0_i32 = arith.constant 0 : i32
    %c0_i32_0 = arith.constant 0 : i32
    %c0_i32_1 = arith.constant 0 : i32
    return %c0_i32, %c0_i32_0 : i32, i32
  }
  func.func @transform_2(%arg0: i32) -> (i32, i32) {
    %c0_i32 = arith.constant 0 : i32
    %c0_i32_0 = arith.constant 0 : i32
    %c0_i32_1 = arith.constant 0 : i32
    return %c0_i32, %c0_i32_0 : i32, i32
  }
  func.func @transform_3(%arg0: i32) -> (i32, i32) {
    %c0_i32 = arith.constant 0 : i32
    %c0_i32_0 = arith.constant 0 : i32
    %c0_i32_1 = arith.constant 0 : i32
    return %c0_i32, %c0_i32_0 : i32, i32
  }
  func.func @transform_4(%arg0: i32) -> (i32, i32) {
    %c0_i32 = arith.constant 0 : i32
    %c0_i32_0 = arith.constant 0 : i32
    %c0_i32_1 = arith.constant 0 : i32
    return %c0_i32, %c0_i32_0 : i32, i32
  }
  func.func @transform_5(%arg0: i32) -> (i32, i32) {
    %c0_i32 = arith.constant 0 : i32
    %c0_i32_0 = arith.constant 0 : i32
    return %arg0, %c0_i32 : i32, i32
  }
}

</mosaic_0001>

<bundles_post_ra>
// kernel: shortest_path_net_forward.1
= control target key start
LH: loop header
LB: loop body
LE: loop exit
PB: predicated region body
PF: predicated region fallthrough
CT: control target
= control target key end

     0   :  { %vm27_vm0 = vcmask 64512   ;;  %s235_s0 = inlined_call_operand.vmem [shape: f32[2,8], index: 0, kind: input, shape index: {}]   ;;  %s236_s1 = inlined_call_operand.vmem [shape: f32[8,128], index: 1, kind: input, shape index: {}]   ;;  %s237_s2 = inlined_call_operand.vmem [shape: f32[1,128], index: 2, kind: input, shape index: {}]   ;;  %s238_s3 = inlined_call_operand.vmem [shape: f32[128,24], index: 3, kind: input, shape index: {}]   ;;  %s239_s4 = inlined_call_operand.vmem [shape: f32[1,24], index: 4, kind: input, shape index: {}]   ;;  %s240_s5 = inlined_call_operand.hbm [shape: f32[2,24], index: 5, kind: output, shape index: {}]  }
   0x1   :  { %v22_v0 = vld [vmem:[%s236_s1] sm:$0xff]  ;;  %v68_v2 = vld [vmem:[%s238_s3 + $0x78] sm:$0xff]  ;;  %v67_v3 = vld [vmem:[%s238_s3 + $0x70] sm:$0xff] }
   0x2   :  { %v21_v1 = vld [vmem:[%s235_s0] sm:$0x3]  ;;  %46 = vmatpush.msra.mxu0 %v22_v0  ;;  %73 = vmatpush.msra.mxu1 %v68_v2  ;;  %v66_v4 = vld [vmem:[%s238_s3 + $0x68] sm:$0xff] }
   0x3   :  { %111 = vmatmul.msk.f32.vlgmr.msra.gmra.mxu0 %vm27_vm0, %v21_v1  ;;  %v65_v5 = vld [vmem:[%s238_s3 + $0x60] sm:$0xff] }
   0x4   :  { %74 = vmatpush.msra.mxu1 %v67_v3 }
   0x6   :  { %75 = vmatpush.msra.mxu1 %v66_v4 }
   0x7   :  { %10 = vsyncpa [#allocation3], 0  ;;  %v64_v6 = vld [vmem:[%s238_s3 + $0x58] sm:$0xff]  ;;  %v63_v7 = vld [vmem:[%s238_s3 + $0x50] sm:$0xff]  ;;  %s141_s29 = smov [#allocation2]   ;;  %vm93_vm1 = vcmask 189440  }
   0x8   :  { %76 = vmatpush.msra.mxu1 %v65_v5  ;;  %v62_v8 = vld [vmem:[%s238_s3 + $0x48] sm:$0xff]  ;;  %v61_v9 = vld [vmem:[%s238_s3 + $0x40] sm:$0xff]  ;;  %v60_v10 = vld [vmem:[%s238_s3 + $0x38] sm:$0xff]  ;;  %s100_s30 = sshll.u32 %s141_s29, 4  ;;  %s101_s30 = int_to_ptr.vmem [resolvable:$true] %s100_s30 }
   0x9   :  { %v59_v11 = vld [vmem:[%s238_s3 + $0x30] sm:$0xff]  ;;  %v58_v12 = vld [vmem:[%s238_s3 + $0x28] sm:$0xff]  ;;  %v57_v13 = vld [vmem:[%s238_s3 + $0x20] sm:$0xff] }
   0xa   :  { %77 = vmatpush.msra.mxu1 %v64_v6  ;;  %v56_v14 = vld [vmem:[%s238_s3 + $0x18] sm:$0xff]  ;;  %v55_v15 = vld [vmem:[%s238_s3 + $0x10] sm:$0xff]  ;;  %v54_v16 = vld [vmem:[%s238_s3 + $0x8] sm:$0xff] }
   0xb   :  { %v53_v17 = vld [vmem:[%s238_s3] sm:$0xff]  ;;  %s102_s3 = sshll.u32 %s240_s5, 4  ;;  %s103_s3 = int_to_ptr.hbm [resolvable:$true] %s102_s3 }
   0xc   :  { %78 = vmatpush.msra.mxu1 %v63_v7  ;;  %v113_v18 = vld [vmem:[%s237_s2] ss:$0 sm:$0xff] }
   0xd   :  { %v114_v23 = vld [vmem:[%s239_s4] ss:$0 sm:$0xff] }
   0xe   :  { %79 = vmatpush.msra.mxu1 %v62_v8 }
  0x10   :  { %80 = vmatpush.msra.mxu1 %v61_v9 }
  0x12   :  { %81 = vmatpush.msra.mxu1 %v60_v10 }
  0x14   :  { %82 = vmatpush.msra.mxu1 %v59_v11 }
  0x16   :  { %83 = vmatpush.msra.mxu1 %v58_v12 }
  0x18   :  { %84 = vmatpush.msra.mxu1 %v57_v13 }
  0x1a   :  { %85 = vmatpush.msra.mxu1 %v56_v14 }
  0x1c   :  { %86 = vmatpush.msra.mxu1 %v55_v15 }
  0x1e   :  { %87 = vmatpush.msra.mxu1 %v54_v16 }
  0x20   :  { %88 = vmatpush.msra.mxu1 %v53_v17 }
  0x80   :  { %v48_v19 = vpop.f32.mrf.mxu0 }
  0x81   :  { %v49_v20 = vadd.f32 %v113_v18, %v48_v19 }
  0x83   :  { %v51_v21 = vmul.f32 0.1, %v49_v20 }
  0x85   :  { %v52_v22 = vmax.f32 %v49_v20, %v51_v21 }
  0x87   :  { %89 = vmatmul.f32.vlgmr.msra.gmra.mxu1 %v52_v22 }
 0x104   :  { %v90_v24 = vpop.f32.mrf.mxu1 }
 0x105   :  { %v91_v25 = vadd.f32 %v114_v23, %v90_v24 }
 0x107   :  { %94 = vst.msk [vmem:[#allocation2] sm:$0x3] %vm93_vm1, %v91_v25 }
 0x108   :  { %105 = dma.vmem_to_hbm [thread:$0]  %s101_s30, 32, %s103_s3, [#allocation3]  }
 0x109   :  { %139 = dma.done.wait [#allocation3], 32  }
 0x10a   :  { %140 = vsyncadd [#allocation3], 4294967264 }
 0x10b   :  { %110 = vsyncpa [#allocation3], 1 }

</bundles_post_ra>
